<compile_context>
chip_gen: v7x
topology: tpu7x:2x2x1
jax: 0.10.0
libtpu: 0.0.40
codegen_flags: <defaults>
</compile_context>

<pallas_src>
import functools

import jax
import jax.numpy as jnp
from jax.experimental import pallas as pl
from jax.experimental.pallas import tpu as pltpu


def _round_up(x, m):
    return ((x + m - 1) // m) * m


def _cdiv(a, b):
    return (a + b - 1) // b


def _maybe_pad2d(a, pad_r, pad_c):
    if pad_r == 0 and pad_c == 0:
        return a
    return jnp.pad(a, ((0, pad_r), (0, pad_c)))


def _maybe_pad1d(a, pad):
    if pad == 0:
        return a
    return jnp.pad(a, (0, pad))


_INV_SQRT2 = 0.7071067811865476

# Conservative VMEM numbers that are safe on v5e / v6e / v7x
# (v7x has only 64 MiB physical VMEM per TensorCore).
_VMEM_LIMIT_BYTES = 56 * 1024 * 1024        # cap handed to the compiler
_RESIDENT_WEIGHT_BUDGET = 44 * 1024 * 1024  # estimate threshold for the fused path


def _gelu_exact_f32(h):
    # Exact (erf) GELU — matches torch.nn.GELU(approximate='none').
    return 0.5 * h * (1.0 + jax.lax.erf(h * jnp.float32(_INV_SQRT2)))


def _residual_ffn_fused_kernel(x_ref, w1_ref, b1_ref, w2_ref, b2_ref, o_ref):
    """One row tile, full hidden dim resident: out = GELU(x@W1+b1)@W2 + b2 + x."""
    x = x_ref[...]
    # First linear: native-dtype operands straight to the MXU, f32 accumulate.
    h = jnp.dot(x, w1_ref[...], preferred_element_type=jnp.float32)
    h = _gelu_exact_f32(h + b1_ref[...].astype(jnp.float32))
    # Dropout(p=0.0) is the identity — nothing to do.
    # TODO(synk): for p > 0 in training mode, draw a mask via pltpu.prng_random_bits.
    out = jnp.dot(h.astype(w2_ref.dtype), w2_ref[...],
                  preferred_element_type=jnp.float32)
    # Bias + residual connection: fn(x) + x.
    out = out + b2_ref[...].astype(jnp.float32) + x.astype(jnp.float32)
    o_ref[...] = out.astype(o_ref.dtype)


def _residual_ffn_tiled_kernel(x_ref, w1_ref, b1_ref, w2_ref, b2_ref, o_ref, acc_ref):
    """(row tile, hidden tile) step with an f32 VMEM accumulator over hidden."""
    j = pl.program_id(1)

    @pl.when(j == 0)
    def _init():
        acc_ref[...] = jnp.zeros_like(acc_ref)

    h = jnp.dot(x_ref[...], w1_ref[...], preferred_element_type=jnp.float32)
    h = _gelu_exact_f32(h + b1_ref[...].astype(jnp.float32))
    acc_ref[...] += jnp.dot(h.astype(w2_ref.dtype), w2_ref[...],
                            preferred_element_type=jnp.float32)

    @pl.when(j == pl.num_programs(1) - 1)
    def _finalize():
        out = acc_ref[...] + b2_ref[...].astype(jnp.float32)
        out = out + x_ref[...].astype(jnp.float32)
        o_ref[...] = out.astype(o_ref.dtype)


@functools.partial(jax.jit, static_argnames=("row_tile", "hidden_tile"))
def residual_feed_forward(x, w1, b1, w2, b2, *, row_tile=512, hidden_tile=512):
    """x: (batch, seq, dim). Returns GELU(x@W1+b1)@W2 + b2 + x, shape (batch, seq, dim)."""
    batch, seq, dim = x.shape
    hidden = w1.shape[1]
    rows = batch * seq

    isz_x = jnp.dtype(x.dtype).itemsize
    isz_w = jnp.dtype(w1.dtype).itemsize

    # ---- lane/sublane-friendly padded sizes (zero padding is mathematically inert) ----
    sublane = 8 if isz_x >= 4 else 16
    dim_p = _round_up(dim, 128)            # lane-dense output / MXU N, K
    hidden_p = _round_up(hidden, 128)

    # Row tile: as large as allowed, but guarantee >= 2 row tiles whenever there
    # is more than one sublane of rows so v7x's two TensorCores both get work.
    rows_aligned = _round_up(rows, sublane)
    tm = min(row_tile, rows_aligned)
    if rows_aligned <= row_tile and rows_aligned > sublane:
        tm = _round_up(_cdiv(rows_aligned, 2), sublane)
    rows_p = _round_up(rows, tm)
    n_row_tiles = rows_p // tm

    # ---- path selection: weights fully resident (fused) vs. hidden tiling ----
    weight_bytes = 2 * dim_p * hidden_p * isz_w               # W1 + W2, one copy
    fused_vmem = (2 * weight_bytes                            # double-buffered weights
                  + 4 * tm * dim_p * isz_x                    # x + out tiles, double-buffered
                  + 2 * tm * hidden_p * 4                     # f32 hidden temporaries
                  + 2 * tm * dim_p * 4                        # f32 output temporary
                  + 2 * 8 * (hidden_p + dim_p) * isz_w)       # biases (sublane-padded)
    use_fused = fused_vmem <= _RESIDENT_WEIGHT_BUDGET

    if use_fused:
        hidden_pad = hidden_p
    else:
        # Pick th so n_h * th over-pads hidden_p by at most 127 columns.
        n_h = _cdiv(hidden_p, hidden_tile)
        th = _round_up(_cdiv(hidden_p, n_h), 128)
        hidden_pad = th * n_h

    # ---- pad operands (skipped when already aligned) ----
    x2d = x.reshape(rows, dim)
    x2d = _maybe_pad2d(x2d, rows_p - rows, dim_p - dim)
    w1_p = _maybe_pad2d(w1, dim_p - dim, hidden_pad - hidden)
    b1_p = _maybe_pad1d(b1, hidden_pad - hidden).reshape(1, hidden_pad)
    w2_p = _maybe_pad2d(w2, hidden_pad - hidden, dim_p - dim)
    b2_p = _maybe_pad1d(b2, dim_p - dim).reshape(1, dim_p)

    flops = 4 * rows_p * dim_p * hidden_pad                   # two matmuls
    transcendentals = rows_p * hidden_pad                     # erf per hidden element

    if use_fused:
        cost = pl.CostEstimate(
            flops=flops,
            transcendentals=transcendentals,
            bytes_accessed=(2 * rows_p * dim_p * isz_x            # x in + out
                            + 2 * dim_p * hidden_pad * isz_w      # W1 + W2 fetched once
                            + (hidden_pad + dim_p) * isz_w),      # biases
        )
        out2d = pl.pallas_call(
            _residual_ffn_fused_kernel,
            out_shape=jax.ShapeDtypeStruct((rows_p, dim_p), x.dtype),
            grid_spec=pltpu.PrefetchScalarGridSpec(
                num_scalar_prefetch=0,
                grid=(n_row_tiles,),
                in_specs=[
                    # x row tile
                    pl.BlockSpec((tm, dim_p), lambda i: (i, 0)),
                    # W1 / b1 / W2 / b2: constant block index -> DMA'd once,
                    # held resident in VMEM across all row tiles.
                    pl.BlockSpec((dim_p, hidden_pad), lambda i: (0, 0)),
                    pl.BlockSpec((1, hidden_pad), lambda i: (0, 0)),
                    pl.BlockSpec((hidden_pad, dim_p), lambda i: (0, 0)),
                    pl.BlockSpec((1, dim_p), lambda i: (0, 0)),
                ],
                out_specs=pl.BlockSpec((tm, dim_p), lambda i: (i, 0)),
            ),
            compiler_params=pltpu.CompilerParams(
                dimension_semantics=("parallel",),
                vmem_limit_bytes=_VMEM_LIMIT_BYTES,
            ),
            cost_estimate=cost,
        )(x2d, w1_p, b1_p, w2_p, b2_p)
    else:
        grid = (n_row_tiles, hidden_pad // th)
        cost = pl.CostEstimate(
            flops=flops,
            transcendentals=transcendentals,
            bytes_accessed=(2 * rows_p * dim_p * isz_x
                            # weights are re-streamed once per row tile
                            + n_row_tiles * 2 * dim_p * hidden_pad * isz_w
                            + (hidden_pad + dim_p) * isz_w),
        )
        out2d = pl.pallas_call(
            _residual_ffn_tiled_kernel,
            out_shape=jax.ShapeDtypeStruct((rows_p, dim_p), x.dtype),
            grid_spec=pltpu.PrefetchScalarGridSpec(
                num_scalar_prefetch=0,
                grid=grid,
                in_specs=[
                    # x row tile: constant over the hidden axis (no re-fetch per j).
                    pl.BlockSpec((tm, dim_p), lambda i, j: (i, 0)),
                    # W1 hidden slice (dim, th)
                    pl.BlockSpec((dim_p, th), lambda i, j: (0, j)),
                    # b1 hidden slice
                    pl.BlockSpec((1, th), lambda i, j: (0, j)),
                    # W2 hidden slice (th, dim)
                    pl.BlockSpec((th, dim_p), lambda i, j: (j, 0)),
                    # b2 (full)
                    pl.BlockSpec((1, dim_p), lambda i, j: (0, 0)),
                ],
                out_specs=pl.BlockSpec((tm, dim_p), lambda i, j: (i, 0)),
                scratch_shapes=[pltpu.VMEM((tm, dim_p), jnp.float32)],
            ),
            compiler_params=pltpu.CompilerParams(
                dimension_semantics=("parallel", "arbitrary"),
                vmem_limit_bytes=_VMEM_LIMIT_BYTES,
            ),
            cost_estimate=cost,
        )(x2d, w1_p, b1_p, w2_p, b2_p)

    return out2d[:rows, :dim].reshape(batch, seq, dim)


def _reference(x, w1, b1, w2, b2):
    h = x @ w1 + b1
    h = jax.nn.gelu(h, approximate=False)
    return h @ w2 + b2 + x          # Residual: fn(x) + x


if __name__ == "__main__":
    # Small shapes consistent with the module: tokens of width `dim`,
    # hidden expansion `hidden_dim`.
    batch, seq, dim, hidden_dim = 2, 8, 32, 64

    key = jax.random.PRNGKey(0)
    kx, kw1, kb1, kw2, kb2 = jax.random.split(key, 5)

    x = jax.random.normal(kx, (batch, seq, dim), dtype=jnp.float32)

    # Deterministic parameter init (nn.Linear-style scale 1/sqrt(fan_in)).
    w1 = jax.random.uniform(kw1, (dim, hidden_dim), jnp.float32, -1.0, 1.0) / jnp.sqrt(dim)
    b1 = jax.random.uniform(kb1, (hidden_dim,), jnp.float32, -1.0, 1.0) / jnp.sqrt(dim)
    w2 = jax.random.uniform(kw2, (hidden_dim, dim), jnp.float32, -1.0, 1.0) / jnp.sqrt(hidden_dim)
    b2 = jax.random.uniform(kb2, (dim,), jnp.float32, -1.0, 1.0) / jnp.sqrt(hidden_dim)

    out = residual_feed_forward(x, w1, b1, w2, b2)
    out = jax.block_until_ready(out)

    ref = _reference(x, w1, b1, w2, b2)
    assert out.shape == (batch, seq, dim)
    assert jnp.allclose(out, ref, atol=1e-5, rtol=1e-5), "mismatch vs. pure-JAX reference"

    print("KERNEL_OK")
</pallas_src>

<mosaic_0001>
module attributes {stable_mosaic.version = 11 : i64} {
  func.func @_residual_ffn_fused_kernel(%arg0: i32, %arg1: memref<8x128xf32, #tpu.memory_space<vmem>>, %arg2: memref<128x128xf32, #tpu.memory_space<vmem>>, %arg3: memref<1x128xf32, #tpu.memory_space<vmem>>, %arg4: memref<128x128xf32, #tpu.memory_space<vmem>>, %arg5: memref<1x128xf32, #tpu.memory_space<vmem>>, %arg6: memref<8x128xf32, #tpu.memory_space<vmem>>) attributes {dimension_semantics = [#tpu.dimension_semantics<parallel>], iteration_bounds = array<i64: 2>, scalar_prefetch = 0 : i64, scratch_operands = 0 : i64, tpu.core_type = #tpu.core_type<tc>, window_params = [{transform_indices = @transform_0, window_bounds = array<i64: 8, 128>}, {pipeline_mode = #tpu.pipeline_mode<synchronous>, transform_indices = @transform_1, window_bounds = array<i64: 128, 128>}, {pipeline_mode = #tpu.pipeline_mode<synchronous>, transform_indices = @transform_2, window_bounds = array<i64: 1, 128>}, {pipeline_mode = #tpu.pipeline_mode<synchronous>, transform_indices = @transform_3, window_bounds = array<i64: 128, 128>}, {pipeline_mode = #tpu.pipeline_mode<synchronous>, transform_indices = @transform_4, window_bounds = array<i64: 1, 128>}, {transform_indices = @transform_5, window_bounds = array<i64: 8, 128>}]} {
    %c0 = arith.constant 0 : index
    %c0_0 = arith.constant 0 : index
    %0 = vector.load %arg1[%c0, %c0_0] : memref<8x128xf32, #tpu.memory_space<vmem>>, vector<8x128xf32>
    %c0_1 = arith.constant 0 : index
    %c0_2 = arith.constant 0 : index
    %1 = vector.load %arg2[%c0_1, %c0_2] : memref<128x128xf32, #tpu.memory_space<vmem>>, vector<128x128xf32>
    %cst = arith.constant dense<0.000000e+00> : vector<8x128xf32>
    %2 = tpu.matmul %0, %1, %cst {dimension_numbers = #tpu.dot_dimension_numbers<[1], [0], [0], [1], [0, 0, 1, 1], [], []>} : vector<8x128xf32>, vector<128x128xf32>, vector<8x128xf32> -> vector<8x128xf32>
    %c0_3 = arith.constant 0 : index
    %c0_4 = arith.constant 0 : index
    %3 = vector.load %arg3[%c0_3, %c0_4] : memref<1x128xf32, #tpu.memory_space<vmem>>, vector<1x128xf32>
    %4 = vector.broadcast %3 : vector<1x128xf32> to vector<8x128xf32>
    %5 = arith.addf %2, %4 : vector<8x128xf32>
    %cst_5 = arith.constant 5.000000e-01 : f32
    %6 = vector.broadcast %cst_5 : f32 to vector<8x128xf32>
    %7 = arith.mulf %6, %5 : vector<8x128xf32>
    %cst_6 = arith.constant 0.707106769 : f32
    %8 = vector.broadcast %cst_6 : f32 to vector<8x128xf32>
    %9 = arith.mulf %5, %8 : vector<8x128xf32>
    %10 = math.erf %9 : vector<8x128xf32>
    %cst_7 = arith.constant 1.000000e+00 : f32
    %11 = vector.broadcast %cst_7 : f32 to vector<8x128xf32>
    %12 = arith.addf %11, %10 : vector<8x128xf32>
    %13 = arith.mulf %7, %12 : vector<8x128xf32>
    %c0_8 = arith.constant 0 : index
    %c0_9 = arith.constant 0 : index
    %14 = vector.load %arg4[%c0_8, %c0_9] : memref<128x128xf32, #tpu.memory_space<vmem>>, vector<128x128xf32>
    %cst_10 = arith.constant dense<0.000000e+00> : vector<8x128xf32>
    %15 = tpu.matmul %13, %14, %cst_10 {dimension_numbers = #tpu.dot_dimension_numbers<[1], [0], [0], [1], [0, 0, 1, 1], [], []>} : vector<8x128xf32>, vector<128x128xf32>, vector<8x128xf32> -> vector<8x128xf32>
    %c0_11 = arith.constant 0 : index
    %c0_12 = arith.constant 0 : index
    %16 = vector.load %arg5[%c0_11, %c0_12] : memref<1x128xf32, #tpu.memory_space<vmem>>, vector<1x128xf32>
    %17 = vector.broadcast %16 : vector<1x128xf32> to vector<8x128xf32>
    %18 = arith.addf %15, %17 : vector<8x128xf32>
    %19 = arith.addf %18, %0 : vector<8x128xf32>
    %c0_13 = arith.constant 0 : index
    %c0_14 = arith.constant 0 : index
    %20 = vector.load %arg6[%c0_13, %c0_14] : memref<8x128xf32, #tpu.memory_space<vmem>>, vector<8x128xf32>
    tpu.vector_store %arg6[%c0_13, %c0_14], %19 {strides = array<i32>} : memref<8x128xf32, #tpu.memory_space<vmem>>, vector<8x128xf32>,
    return
  }
  func.func @transform_0(%arg0: i32) -> (i32, i32) {
    %c0_i32 = arith.constant 0 : i32
    %c0_i32_0 = arith.constant 0 : i32
    return %arg0, %c0_i32 : i32, i32
  }
  func.func @transform_1(%arg0: i32) -> (i32, i32) {
    %c0_i32 = arith.constant 0 : i32
    %c0_i32_0 = arith.constant 0 : i32
    %c0_i32_1 = arith.constant 0 : i32
    return %c0_i32, %c0_i32_0 : i32, i32
  }
  func.func @transform_2(%arg0: i32) -> (i32, i32) {
    %c0_i32 = arith.constant 0 : i32
    %c0_i32_0 = arith.constant 0 : i32
    %c0_i32_1 = arith.constant 0 : i32
    return %c0_i32, %c0_i32_0 : i32, i32
  }
  func.func @transform_3(%arg0: i32) -> (i32, i32) {
    %c0_i32 = arith.constant 0 : i32
    %c0_i32_0 = arith.constant 0 : i32
    %c0_i32_1 = arith.constant 0 : i32
    return %c0_i32, %c0_i32_0 : i32, i32
  }
  func.func @transform_4(%arg0: i32) -> (i32, i32) {
    %c0_i32 = arith.constant 0 : i32
    %c0_i32_0 = arith.constant 0 : i32
    %c0_i32_1 = arith.constant 0 : i32
    return %c0_i32, %c0_i32_0 : i32, i32
  }
  func.func @transform_5(%arg0: i32) -> (i32, i32) {
    %c0_i32 = arith.constant 0 : i32
    %c0_i32_0 = arith.constant 0 : i32
    return %arg0, %c0_i32 : i32, i32
  }
}

</mosaic_0001>

<bundles_post_ra>
// kernel: residual_feed_forward.1
= control target key start
LH: loop header
LB: loop body
LE: loop exit
PB: predicated region body
PF: predicated region fallthrough
CT: control target
= control target key end

     0   :  { %s684_s18 = smov 0   ;;  %s830_s0 = inlined_call_operand.vmem [shape: f32[16,128], index: 0, kind: input, shape index: {}]   ;;  %s831_s1 = inlined_call_operand.vmem [shape: f32[128,128], index: 1, kind: input, shape index: {}]   ;;  %s832_s2 = inlined_call_operand.vmem [shape: f32[1,128], index: 2, kind: input, shape index: {}]   ;;  %s833_s3 = inlined_call_operand.vmem [shape: f32[128,128], index: 3, kind: input, shape index: {}]   ;;  %s834_s4 = inlined_call_operand.vmem [shape: f32[1,128], index: 4, kind: input, shape index: {}]   ;;  %s835_s5 = inlined_call_operand.vmem [shape: f32[16,128], index: 5, kind: output, shape index: {}]  }
   0x1 LB: > { %s467_s19 = sadd.s32 4294967295, %s649_s18   ;;  %p471_p0 = scmp.ge.s32.totalorder %s649_s18, 1  ;;  %s649_s18 = sphi %s684_s18, %s15_s18  }
   0x2   : > { %p186_p1 = scmp.lt.s32.totalorder %s649_s18, 3 }
   0x4   : > { %p187_p2 = pnand %p471_p0, %p186_p1 }
   0x5   : > { %v221_v0 = vld [vmem:[%s831_s1] sm:$0xff] (!%p187_p2)  ;;  %v222_v1 = vld [vmem:[%s831_s1 + $0x8] sm:$0xff] (!%p187_p2)  ;;  %v223_v2 = vld [vmem:[%s831_s1 + $0x10] sm:$0xff] (!%p187_p2)  ;;  %v651_v3 = vmov (!%p187_p2), 0.0|0.0   ;;  %vm652_vm0 = vmmov (!%p187_p2), 0   ;;  %v653_v6 = vmov (!%p187_p2), 0.0  }
   0x6   : > { %190 = sbr.rel (%p187_p2) target bundleno = 487 (0x1e7), region = 40  ;;  %582 = vmatprep.subr.bf16.mxu0 (!%p187_p2), %v651_v3  ;;  %v583_v4 = vpack.c.bf16 (!%p187_p2), %v222_v1, %v221_v0  ;;  %v224_v5 = vld [vmem:[%s831_s1 + $0x18] sm:$0xff] (!%p187_p2)  ;;  %544 = vmatprep.mubr.msk.f32.mxu0 (!%p187_p2), %vm652_vm0, %v653_v6  ;;  %v225_v8 = vld [vmem:[%s831_s1 + $0x20] sm:$0xff] (!%p187_p2)  ;;  %v226_v9 = vld [vmem:[%s831_s1 + $0x28] sm:$0xff] (!%p187_p2)  ;;  %p212_p3 = scmp.lt.s32.totalorder (!%p187_p2), %s467_s19, 1 }
   0x7   : > { %606 = vmatprep.subr.bf16.mxu1 (!%p187_p2), %v651_v3  ;;  %579 = vmatprep.mubr.msk.f32.mxu1 (!%p187_p2), %vm652_vm0, %v653_v6  ;;  %v586_v7 = vpack.c.bf16 (!%p187_p2), %v224_v5, %v223_v2  ;;  %v319_v10 = vld [vmem:[%s833_s3] sm:$0xff] (!%p187_p2)  ;;  %v320_v11 = vld [vmem:[%s833_s3 + $0x8] sm:$0xff] (!%p187_p2)  ;;  %v321_v13 = vld [vmem:[%s833_s3 + $0x10] sm:$0xff] (!%p187_p2)  ;;  %v589_v15 = vpack.c.bf16 (!%p187_p2), %v226_v9, %v225_v8 }
   0x8   : > { %584 = vmatpush3.bf16.msra.mxu0 (!%p187_p2), %v583_v4  ;;  %v607_v12 = vpack.c.bf16 (!%p187_p2), %v320_v11, %v319_v10  ;;  %v322_v14 = vld [vmem:[%s833_s3 + $0x18] sm:$0xff] (!%p187_p2)  ;;  %v227_v16 = vld [vmem:[%s831_s1 + $0x30] sm:$0xff] (!%p187_p2)  ;;  %v323_v19 = vld [vmem:[%s833_s3 + $0x20] sm:$0xff] (!%p187_p2) }
   0x9   : > { %585 = vmatprep.subr.bf16.mxu0 (!%p187_p2), %v651_v3  ;;  %v228_v17 = vld [vmem:[%s831_s1 + $0x38] sm:$0xff] (!%p187_p2)  ;;  %v610_v18 = vpack.c.bf16 (!%p187_p2), %v322_v14, %v321_v13  ;;  %v324_v20 = vld [vmem:[%s833_s3 + $0x28] sm:$0xff] (!%p187_p2)  ;;  %v229_v22 = vld [vmem:[%s831_s1 + $0x40] sm:$0xff] (!%p187_p2) }
   0xa   : > { %608 = vmatpush3.bf16.msra.mxu1 (!%p187_p2), %v607_v12  ;;  %v592_v21 = vpack.c.bf16 (!%p187_p2), %v228_v17, %v227_v16  ;;  %v230_v23 = vld [vmem:[%s831_s1 + $0x48] sm:$0xff] (!%p187_p2)  ;;  %v613_v24 = vpack.c.bf16 (!%p187_p2), %v324_v20, %v323_v19  ;;  %v231_v26 = vld [vmem:[%s831_s1 + $0x50] sm:$0xff] (!%p187_p2)  ;;  %v232_v27 = vld [vmem:[%s831_s1 + $0x58] sm:$0xff] (!%p187_p2) }
   0xb   : > { %609 = vmatprep.subr.bf16.mxu1 (!%p187_p2), %v651_v3  ;;  %v595_v25 = vpack.c.bf16 (!%p187_p2), %v230_v23, %v229_v22  ;;  %v598_v28 = vpack.c.bf16 (!%p187_p2), %v232_v27, %v231_v26  ;;  %v233_v29 = vld [vmem:[%s831_s1 + $0x60] sm:$0xff] (!%p187_p2)  ;;  %v234_v30 = vld [vmem:[%s831_s1 + $0x68] sm:$0xff] (!%p187_p2)  ;;  %v235_v32 = vld [vmem:[%s831_s1 + $0x70] sm:$0xff] (!%p187_p2) }
   0xc   : > { %587 = vmatpush3.bf16.msra.mxu0 (!%p187_p2), %v586_v7  ;;  %v601_v31 = vpack.c.bf16 (!%p187_p2), %v234_v30, %v233_v29  ;;  %v236_v33 = vld [vmem:[%s831_s1 + $0x78] sm:$0xff] (!%p187_p2)  ;;  %v325_v36 = vld [vmem:[%s833_s3 + $0x30] sm:$0xff] (!%p187_p2)  ;;  %v327_v39 = vld [vmem:[%s833_s3 + $0x40] sm:$0xff] (!%p187_p2) }
   0xd   : > { %588 = vmatprep.subr.bf16.mxu0 %v651_v3  ;;  %s837_s19 = smov (!%p212_p3, %s467_s19), 1  ;;  %v604_v34 = vpack.c.bf16 %v236_v33, %v235_v32  ;;  %v326_v37 = vld [vmem:[%s833_s3 + $0x38] sm:$0xff]  ;;  %v328_v40 = vld [vmem:[%s833_s3 + $0x48] sm:$0xff]  ;;  %v329_v42 = vld [vmem:[%s833_s3 + $0x50] sm:$0xff] }
   0xe   : > { %611 = vmatpush3.bf16.msra.mxu1 %v610_v18  ;;  %s472_s16 = sshll.u32 %s837_s19, 3  ;;  %v616_v38 = vpack.c.bf16 %v326_v37, %v325_v36  ;;  %v619_v41 = vpack.c.bf16 %v328_v40, %v327_v39  ;;  %v330_v43 = vld [vmem:[%s833_s3 + $0x58] sm:$0xff]  ;;  %v331_v45 = vld [vmem:[%s833_s3 + $0x60] sm:$0xff]  ;;  %v332_v46 = vld [vmem:[%s833_s3 + $0x68] sm:$0xff] }
   0xf   : > { %612 = vmatprep.subr.bf16.mxu1 %v651_v3  ;;  %s215_s21 = scalar_lea.vmem %s830_s0, %s472_s16  ;;  %v622_v44 = vpack.c.bf16 %v330_v43, %v329_v42  ;;  %v625_v47 = vpack.c.bf16 %v332_v46, %v331_v45  ;;  %v333_v48 = vld [vmem:[%s833_s3 + $0x70] sm:$0xff]  ;;  %v334_v49 = vld [vmem:[%s833_s3 + $0x78] sm:$0xff]  ;;  %v474_v51 = vld [vmem:[%s832_s2] ss:$0 sm:$0xff]  ;;  %s219_s26 = scalar_lea.vmem %s835_s5, %s472_s16 }
  0x10   : > { %590 = vmatpush3.bf16.msra.mxu0 %v589_v15  ;;  %v220_v35 = vld [vmem:[%s215_s21] sm:$0xff]  ;;  %v628_v50 = vpack.c.bf16 %v334_v49, %v333_v48 }
  0x11   : > { %591 = vmatprep.subr.bf16.mxu0 %v651_v3  ;;  %v475_v60 = vld [vmem:[%s834_s4] ss:$0 sm:$0xff] }
  0x12   : > { %614 = vmatpush3.bf16.msra.mxu1 %v613_v24 }
  0x13   : > { %615 = vmatprep.subr.bf16.mxu1 %v651_v3 }
  0x14   : > { %593 = vmatpush3.bf16.msra.mxu0 %v592_v21 }
  0x15   : > { %594 = vmatprep.subr.bf16.mxu0 %v651_v3 }
  0x16   : > { %617 = vmatpush3.bf16.msra.mxu1 %v616_v38 }
  0x17   : > { %618 = vmatprep.subr.bf16.mxu1 %v651_v3 }
  0x18   : > { %596 = vmatpush3.bf16.msra.mxu0 %v595_v25 }
  0x19   : > { %597 = vmatprep.subr.bf16.mxu0 %v651_v3 }
  0x1a   : > { %620 = vmatpush3.bf16.msra.mxu1 %v619_v41 }
  0x1b   : > { %621 = vmatprep.subr.bf16.mxu1 %v651_v3 }
  0x1c   : > { %599 = vmatpush3.bf16.msra.mxu0 %v598_v28 }
  0x1d   : > { %600 = vmatprep.subr.bf16.mxu0 %v651_v3 }
  0x1e   : > { %623 = vmatpush3.bf16.msra.mxu1 %v622_v44 }
  0x1f   : > { %624 = vmatprep.subr.bf16.mxu1 %v651_v3 }
  0x20   : > { %602 = vmatpush3.bf16.msra.mxu0 %v601_v31 }
  0x21   : > { %603 = vmatprep.subr.bf16.mxu0 %v651_v3 }
  0x22   : > { %626 = vmatpush3.bf16.msra.mxu1 %v625_v47 }
  0x23   : > { %627 = vmatprep.subr.bf16.mxu1 %v651_v3 }
  0x24   : > { %605 = vmatpush3.bf16.msra.mxu0 %v604_v34 }
  0x26   : > { %629 = vmatpush3.bf16.msra.mxu1 %v628_v50 }
  0x27   : > { %545 = vmatmul.mubr.f32.vlgmr.msra.gmra.mrb[0].mxu0 %v220_v35 }
  0xfa   : > { %v310_v52 = vpop.f32.mrb[0].mxu0 }
  0xfb   : > { %v311_v53 = vadd.f32 %v474_v51, %v310_v52  ;;  %v546_v54 = vpop.f32.mrb[1].mxu0 }
  0xfd   : > { %v315_v55 = vmul.f32 0.70710677, %v311_v53  ;;  %v314_v57 = vmul.f32 0.5, %v311_v53 }
  0xff   : > { %641 = verf.f32 %v315_v55 }
 0x109   : > { %v642_v56 = vpop.eup %641 }
 0x10a   : > { %v317_v58 = vadd.f32 1.0, %v642_v56 }
 0x10c   : > { %v318_v59 = vmul.f32 %v317_v58, %v314_v57 }
 0x10e   : > { %580 = vmatmul.mubr.f32.vlgmr.msra.gmra.mrb[0].mxu1 %v318_v59 }
 0x1e1   : > { %v408_v61 = vpop.f32.mrb[0].mxu1 }
 0x1e2   : > { %v409_v62 = vadd.f32 %v475_v60, %v408_v61  ;;  %v581_v63 = vpop.f32.mrb[1].mxu1 }
 0x1e4   : > { %v412_v0 = vadd.f32 %v409_v62, %v220_v35 }
 0x1e6   : > { %413 = vst [vmem:[%s219_s26] sm:$0xff] %v412_v0 }
 0x1e7 PF: > { %s15_s18 = sadd.s32 1, %s649_s18  }
 0x1e8   : > { %p12_p4 = scmp.ge.s32.totalorder %s15_s18, 4  }
 0x1ea   :  { %14 = sbr.rel (!%p12_p4) target bundleno = 1 (0x1), region = 70 }

</bundles_post_ra>
